<compile_context>
chip_gen: v7x
topology: tpu7x:2x2x1
jax: 0.10.0
libtpu: 0.0.40
codegen_flags: <defaults>
</compile_context>

<pallas_src>
import functools

import jax
import jax.numpy as jnp
from jax.experimental import pallas as pl
from jax.experimental.pallas import tpu as pltpu


def _round_up(n, m):
    return ((n + m - 1) // m) * m


def autoencoder_kernel(x_ref,
                       w1, b1, w2, b2, w3, b3, w45, b45,   # encoder (+ fused latent)
                       w6, b6, w7, b7, w8, b8,             # decoder
                       out_ref):
    """Fused 7-matmul MLP autoencoder forward on one batch tile."""
    def lin(h, w_ref, b_ref):
        # bf16 MXU inputs, f32 accumulation, f32 bias add.
        # (astype is a no-op for the first layer: x arrives already in bf16.)
        return jnp.dot(h.astype(jnp.bfloat16), w_ref[...],
                       preferred_element_type=jnp.float32) + b_ref[...]

    h = x_ref[...]                                        # bf16 input tile

    # --- encoder ---
    h = jnp.maximum(lin(h, w1, b1), 0.0)                  # Linear(F,128) + ReLU (+ Dropout=id)
    h = jnp.maximum(lin(h, w2, b2), 0.0)                  # Linear(128,64) + ReLU (+ Dropout=id)
    h = jnp.maximum(lin(h, w3, b3), 0.0)                  # Linear(64,32)  + ReLU (+ Dropout=id)

    # --- fused latent bottleneck: Linear(32,latent) o Linear(latent,32) + ReLU ---
    h = jnp.maximum(lin(h, w45, b45), 0.0)

    # --- decoder ---
    h = jnp.maximum(lin(h, w6, b6), 0.0)                  # Linear(32,64)   + ReLU
    h = jnp.maximum(lin(h, w7, b7), 0.0)                  # Linear(64,128)  + ReLU
    out_ref[...] = lin(h, w8, b8).astype(out_ref.dtype)   # Linear(128,F)


def init_params(key, in_features, latent_dim):
    """Deterministic PyTorch-style init: U(-1/sqrt(fan_in), 1/sqrt(fan_in)).

    Returns list of (W_T, b) with W_T shaped [in, out] and b shaped [1, out].
    """
    dims = [in_features, 128, 64, 32, latent_dim, 32, 64, 128, in_features]
    params = []
    for fan_in, fan_out in zip(dims[:-1], dims[1:]):
        key, kw, kb = jax.random.split(key, 3)
        bound = 1.0 / (fan_in ** 0.5)
        w_t = jax.random.uniform(kw, (fan_in, fan_out), jnp.float32, -bound, bound)
        b = jax.random.uniform(kb, (1, fan_out), jnp.float32, -bound, bound)
        params.append((w_t, b))
    return params


def prepare_params(params):
    """Fuse the latent bottleneck and cast weights -> bf16 (biases stay f32).

    Input: list of 8 (W_T [in,out] f32, b [1,out] f32).
    Output: flat tuple (w1,b1,...,w8,b8) with 7 layers; weights bf16, biases f32.
    No feature padding: the kernel reads/writes the natural F extent.
    """
    (w1, b1), (w2, b2), (w3, b3), (w4, b4), (w5, b5), (w6, b6), (w7, b7), (w8, b8) = params

    # No nonlinearity between encoder layer 4 and decoder layer 1 -> fold them.
    w45 = w4 @ w5                       # [32, 32]
    b45 = b4 @ w5 + b5                  # [1, 32]

    ws = [w1, w2, w3, w45, w6, w7, w8]
    bs = [b1, b2, b3, b45, b6, b7, b8]
    flat = []
    for w, b in zip(ws, bs):
        flat.append(w.astype(jnp.bfloat16))
        flat.append(b.astype(jnp.float32))
    return tuple(flat)


@functools.partial(jax.jit, static_argnames=("tb",))
def autoencoder_forward(x, params_flat, tb=512):
    """x: [B, F] (f32 or bf16). params_flat: output of prepare_params. Returns [B, F] f32."""
    B, F = x.shape

    # Adaptive batch tile: multiple of 8 sublanes, capped by tb, sized to B for
    # small batches so tiny inference batches don't pay padded DMA/MXU work.
    tb_eff = min(tb, _round_up(B, 8))
    B_pad = _round_up(B, tb_eff)

    # Stream x in bf16 (halves kernel input HBM traffic); fuse with batch pad.
    xp = x.astype(jnp.bfloat16)
    if B_pad != B:
        xp = jnp.pad(xp, ((0, B_pad - B), (0, 0)))

    # x: tiled over batch; weights/biases: full-array blocks, VMEM-resident
    # across the grid (constant index_map).
    in_specs = [pl.BlockSpec((tb_eff, F), lambda i: (i, 0))]
    for p in params_flat:
        in_specs.append(pl.BlockSpec(p.shape, lambda i: (0, 0)))

    # Advisory cost estimate for XLA's scheduler around the custom call.
    layer_dims = [(F, 128), (128, 64), (64, 32), (32, 32), (32, 64), (64, 128), (128, F)]
    flops = 2 * B_pad * sum(a * b for a, b in layer_dims)
    w_bytes = sum(int(p.size) * p.dtype.itemsize for p in params_flat)
    bytes_accessed = B_pad * F * 2 + B_pad * F * 4 + w_bytes
    cost = pl.CostEstimate(flops=flops, transcendentals=0,
                           bytes_accessed=bytes_accessed)

    out = pl.pallas_call(
        autoencoder_kernel,
        out_shape=jax.ShapeDtypeStruct((B_pad, F), jnp.float32),
        grid=(B_pad // tb_eff,),
        in_specs=in_specs,
        out_specs=pl.BlockSpec((tb_eff, F), lambda i: (i, 0)),
        compiler_params=pltpu.CompilerParams(
            dimension_semantics=("parallel",)),
        cost_estimate=cost,
    )(xp, *params_flat)

    if B_pad != B:
        out = out[:B, :]
    return out


def reference_forward(x, params):
    """Pure-f32 reference with the original 8-layer structure (PyTorch semantics)."""
    h = x
    h = jnp.maximum(h @ params[0][0] + params[0][1], 0.0)
    h = jnp.maximum(h @ params[1][0] + params[1][1], 0.0)
    h = jnp.maximum(h @ params[2][0] + params[2][1], 0.0)
    h = h @ params[3][0] + params[3][1]
    h = jnp.maximum(h @ params[4][0] + params[4][1], 0.0)
    h = jnp.maximum(h @ params[5][0] + params[5][1], 0.0)
    h = jnp.maximum(h @ params[6][0] + params[6][1], 0.0)
    return h @ params[7][0] + params[7][1]


def reference_forward_fused(x, params):
    """Mirrors the kernel's math (fused latent + bf16 dot inputs, f32 accumulate)."""
    (w1, b1), (w2, b2), (w3, b3), (w4, b4), (w5, b5), (w6, b6), (w7, b7), (w8, b8) = params
    w45 = w4 @ w5
    b45 = b4 @ w5 + b5

    def lin(h, w, b):
        return jnp.dot(h.astype(jnp.bfloat16), w.astype(jnp.bfloat16),
                       preferred_element_type=jnp.float32) + b

    h = x
    for w, b in [(w1, b1), (w2, b2), (w3, b3), (w45, b45), (w6, b6), (w7, b7)]:
        h = jnp.maximum(lin(h, w, b), 0.0)
    return lin(h, w8, b8)


if __name__ == "__main__":
    in_features = 64
    latent_dim = 8
    batch = 64

    key = jax.random.PRNGKey(0)
    kx, kp = jax.random.split(key)
    x = jax.random.normal(kx, (batch, in_features), jnp.float32)
    params = init_params(kp, in_features, latent_dim)
    params_flat = prepare_params(params)

    out = autoencoder_forward(x, params_flat)
    out = jax.block_until_ready(out)
    assert out.shape == (batch, in_features)

    # Tight check against a reference that mirrors the kernel's bf16/fusion math.
    ref_fused = reference_forward_fused(x, params)
    assert jnp.allclose(out, ref_fused, atol=1e-3, rtol=1e-3), "mismatch vs fused bf16 reference"

    # Loose check against the pure-f32 PyTorch-semantics reference
    # (bf16 weight/activation quantization => ~5e-2 parity, documented).
    ref_f32 = reference_forward(x, params)
    assert jnp.allclose(out, ref_f32, atol=5e-2, rtol=5e-2), "mismatch vs f32 reference"

    print("KERNEL_OK")
</pallas_src>

<mosaic_0001>
module attributes {stable_mosaic.version = 11 : i64} {
  func.func @autoencoder_kernel(%arg0: i32, %arg1: memref<64x64xbf16, #tpu.memory_space<vmem>>, %arg2: memref<64x128xbf16, #tpu.memory_space<vmem>>, %arg3: memref<1x128xf32, #tpu.memory_space<vmem>>, %arg4: memref<128x64xbf16, #tpu.memory_space<vmem>>, %arg5: memref<1x64xf32, #tpu.memory_space<vmem>>, %arg6: memref<64x32xbf16, #tpu.memory_space<vmem>>, %arg7: memref<1x32xf32, #tpu.memory_space<vmem>>, %arg8: memref<32x32xbf16, #tpu.memory_space<vmem>>, %arg9: memref<1x32xf32, #tpu.memory_space<vmem>>, %arg10: memref<32x64xbf16, #tpu.memory_space<vmem>>, %arg11: memref<1x64xf32, #tpu.memory_space<vmem>>, %arg12: memref<64x128xbf16, #tpu.memory_space<vmem>>, %arg13: memref<1x128xf32, #tpu.memory_space<vmem>>, %arg14: memref<128x64xbf16, #tpu.memory_space<vmem>>, %arg15: memref<1x64xf32, #tpu.memory_space<vmem>>, %arg16: memref<64x64xf32, #tpu.memory_space<vmem>>) attributes {dimension_semantics = [#tpu.dimension_semantics<parallel>], iteration_bounds = array<i64: 1>, scalar_prefetch = 0 : i64, scratch_operands = 0 : i64, tpu.core_type = #tpu.core_type<tc>, window_params = [{transform_indices = @transform_0, window_bounds = array<i64: 64, 64>}, {pipeline_mode = #tpu.pipeline_mode<synchronous>, transform_indices = @transform_1, window_bounds = array<i64: 64, 128>}, {pipeline_mode = #tpu.pipeline_mode<synchronous>, transform_indices = @transform_2, window_bounds = array<i64: 1, 128>}, {pipeline_mode = #tpu.pipeline_mode<synchronous>, transform_indices = @transform_3, window_bounds = array<i64: 128, 64>}, {pipeline_mode = #tpu.pipeline_mode<synchronous>, transform_indices = @transform_4, window_bounds = array<i64: 1, 64>}, {pipeline_mode = #tpu.pipeline_mode<synchronous>, transform_indices = @transform_5, window_bounds = array<i64: 64, 32>}, {pipeline_mode = #tpu.pipeline_mode<synchronous>, transform_indices = @transform_6, window_bounds = array<i64: 1, 32>}, {pipeline_mode = #tpu.pipeline_mode<synchronous>, transform_indices = @transform_7, window_bounds = array<i64: 32, 32>}, {pipeline_mode = #tpu.pipeline_mode<synchronous>, transform_indices = @transform_8, window_bounds = array<i64: 1, 32>}, {pipeline_mode = #tpu.pipeline_mode<synchronous>, transform_indices = @transform_9, window_bounds = array<i64: 32, 64>}, {pipeline_mode = #tpu.pipeline_mode<synchronous>, transform_indices = @transform_10, window_bounds = array<i64: 1, 64>}, {pipeline_mode = #tpu.pipeline_mode<synchronous>, transform_indices = @transform_11, window_bounds = array<i64: 64, 128>}, {pipeline_mode = #tpu.pipeline_mode<synchronous>, transform_indices = @transform_12, window_bounds = array<i64: 1, 128>}, {pipeline_mode = #tpu.pipeline_mode<synchronous>, transform_indices = @transform_13, window_bounds = array<i64: 128, 64>}, {pipeline_mode = #tpu.pipeline_mode<synchronous>, transform_indices = @transform_14, window_bounds = array<i64: 1, 64>}, {transform_indices = @transform_15, window_bounds = array<i64: 64, 64>}]} {
    %c0 = arith.constant 0 : index
    %c0_0 = arith.constant 0 : index
    %0 = vector.load %arg1[%c0, %c0_0] : memref<64x64xbf16, #tpu.memory_space<vmem>>, vector<64x64xbf16>
    %c0_1 = arith.constant 0 : index
    %c0_2 = arith.constant 0 : index
    %1 = vector.load %arg2[%c0_1, %c0_2] : memref<64x128xbf16, #tpu.memory_space<vmem>>, vector<64x128xbf16>
    %cst = arith.constant dense<0.000000e+00> : vector<64x128xf32>
    %2 = tpu.matmul %0, %1, %cst {dimension_numbers = #tpu.dot_dimension_numbers<[1], [0], [0], [1], [0, 0, 1, 1], [], []>} : vector<64x64xbf16>, vector<64x128xbf16>, vector<64x128xf32> -> vector<64x128xf32>
    %c0_3 = arith.constant 0 : index
    %c0_4 = arith.constant 0 : index
    %3 = vector.load %arg3[%c0_3, %c0_4] : memref<1x128xf32, #tpu.memory_space<vmem>>, vector<1x128xf32>
    %4 = vector.broadcast %3 : vector<1x128xf32> to vector<64x128xf32>
    %5 = arith.addf %2, %4 : vector<64x128xf32>
    %cst_5 = arith.constant 0.000000e+00 : f32
    %6 = vector.broadcast %cst_5 : f32 to vector<64x128xf32>
    %7 = arith.maximumf %5, %6 : vector<64x128xf32>
    %8 = arith.truncf %7 : vector<64x128xf32> to vector<64x128xbf16>
    %c0_6 = arith.constant 0 : index
    %c0_7 = arith.constant 0 : index
    %9 = vector.load %arg4[%c0_6, %c0_7] : memref<128x64xbf16, #tpu.memory_space<vmem>>, vector<128x64xbf16>
    %cst_8 = arith.constant dense<0.000000e+00> : vector<64x64xf32>
    %10 = tpu.matmul %8, %9, %cst_8 {dimension_numbers = #tpu.dot_dimension_numbers<[1], [0], [0], [1], [0, 0, 1, 1], [], []>} : vector<64x128xbf16>, vector<128x64xbf16>, vector<64x64xf32> -> vector<64x64xf32>
    %c0_9 = arith.constant 0 : index
    %c0_10 = arith.constant 0 : index
    %11 = vector.load %arg5[%c0_9, %c0_10] : memref<1x64xf32, #tpu.memory_space<vmem>>, vector<1x64xf32>
    %12 = vector.broadcast %11 : vector<1x64xf32> to vector<64x64xf32>
    %13 = arith.addf %10, %12 : vector<64x64xf32>
    %cst_11 = arith.constant 0.000000e+00 : f32
    %14 = vector.broadcast %cst_11 : f32 to vector<64x64xf32>
    %15 = arith.maximumf %13, %14 : vector<64x64xf32>
    %16 = arith.truncf %15 : vector<64x64xf32> to vector<64x64xbf16>
    %c0_12 = arith.constant 0 : index
    %c0_13 = arith.constant 0 : index
    %17 = vector.load %arg6[%c0_12, %c0_13] : memref<64x32xbf16, #tpu.memory_space<vmem>>, vector<64x32xbf16>
    %cst_14 = arith.constant dense<0.000000e+00> : vector<64x32xf32>
    %18 = tpu.matmul %16, %17, %cst_14 {dimension_numbers = #tpu.dot_dimension_numbers<[1], [0], [0], [1], [0, 0, 1, 1], [], []>} : vector<64x64xbf16>, vector<64x32xbf16>, vector<64x32xf32> -> vector<64x32xf32>
    %c0_15 = arith.constant 0 : index
    %c0_16 = arith.constant 0 : index
    %19 = vector.load %arg7[%c0_15, %c0_16] : memref<1x32xf32, #tpu.memory_space<vmem>>, vector<1x32xf32>
    %20 = vector.broadcast %19 : vector<1x32xf32> to vector<64x32xf32>
    %21 = arith.addf %18, %20 : vector<64x32xf32>
    %cst_17 = arith.constant 0.000000e+00 : f32
    %22 = vector.broadcast %cst_17 : f32 to vector<64x32xf32>
    %23 = arith.maximumf %21, %22 : vector<64x32xf32>
    %24 = arith.truncf %23 : vector<64x32xf32> to vector<64x32xbf16>
    %c0_18 = arith.constant 0 : index
    %c0_19 = arith.constant 0 : index
    %25 = vector.load %arg8[%c0_18, %c0_19] : memref<32x32xbf16, #tpu.memory_space<vmem>>, vector<32x32xbf16>
    %cst_20 = arith.constant dense<0.000000e+00> : vector<64x32xf32>
    %26 = tpu.matmul %24, %25, %cst_20 {dimension_numbers = #tpu.dot_dimension_numbers<[1], [0], [0], [1], [0, 0, 1, 1], [], []>} : vector<64x32xbf16>, vector<32x32xbf16>, vector<64x32xf32> -> vector<64x32xf32>
    %c0_21 = arith.constant 0 : index
    %c0_22 = arith.constant 0 : index
    %27 = vector.load %arg9[%c0_21, %c0_22] : memref<1x32xf32, #tpu.memory_space<vmem>>, vector<1x32xf32>
    %28 = vector.broadcast %27 : vector<1x32xf32> to vector<64x32xf32>
    %29 = arith.addf %26, %28 : vector<64x32xf32>
    %cst_23 = arith.constant 0.000000e+00 : f32
    %30 = vector.broadcast %cst_23 : f32 to vector<64x32xf32>
    %31 = arith.maximumf %29, %30 : vector<64x32xf32>
    %32 = arith.truncf %31 : vector<64x32xf32> to vector<64x32xbf16>
    %c0_24 = arith.constant 0 : index
    %c0_25 = arith.constant 0 : index
    %33 = vector.load %arg10[%c0_24, %c0_25] : memref<32x64xbf16, #tpu.memory_space<vmem>>, vector<32x64xbf16>
    %cst_26 = arith.constant dense<0.000000e+00> : vector<64x64xf32>
    %34 = tpu.matmul %32, %33, %cst_26 {dimension_numbers = #tpu.dot_dimension_numbers<[1], [0], [0], [1], [0, 0, 1, 1], [], []>} : vector<64x32xbf16>, vector<32x64xbf16>, vector<64x64xf32> -> vector<64x64xf32>
    %c0_27 = arith.constant 0 : index
    %c0_28 = arith.constant 0 : index
    %35 = vector.load %arg11[%c0_27, %c0_28] : memref<1x64xf32, #tpu.memory_space<vmem>>, vector<1x64xf32>
    %36 = vector.broadcast %35 : vector<1x64xf32> to vector<64x64xf32>
    %37 = arith.addf %34, %36 : vector<64x64xf32>
    %cst_29 = arith.constant 0.000000e+00 : f32
    %38 = vector.broadcast %cst_29 : f32 to vector<64x64xf32>
    %39 = arith.maximumf %37, %38 : vector<64x64xf32>
    %40 = arith.truncf %39 : vector<64x64xf32> to vector<64x64xbf16>
    %c0_30 = arith.constant 0 : index
    %c0_31 = arith.constant 0 : index
    %41 = vector.load %arg12[%c0_30, %c0_31] : memref<64x128xbf16, #tpu.memory_space<vmem>>, vector<64x128xbf16>
    %cst_32 = arith.constant dense<0.000000e+00> : vector<64x128xf32>
    %42 = tpu.matmul %40, %41, %cst_32 {dimension_numbers = #tpu.dot_dimension_numbers<[1], [0], [0], [1], [0, 0, 1, 1], [], []>} : vector<64x64xbf16>, vector<64x128xbf16>, vector<64x128xf32> -> vector<64x128xf32>
    %c0_33 = arith.constant 0 : index
    %c0_34 = arith.constant 0 : index
    %43 = vector.load %arg13[%c0_33, %c0_34] : memref<1x128xf32, #tpu.memory_space<vmem>>, vector<1x128xf32>
    %44 = vector.broadcast %43 : vector<1x128xf32> to vector<64x128xf32>
    %45 = arith.addf %42, %44 : vector<64x128xf32>
    %cst_35 = arith.constant 0.000000e+00 : f32
    %46 = vector.broadcast %cst_35 : f32 to vector<64x128xf32>
    %47 = arith.maximumf %45, %46 : vector<64x128xf32>
    %48 = arith.truncf %47 : vector<64x128xf32> to vector<64x128xbf16>
    %c0_36 = arith.constant 0 : index
    %c0_37 = arith.constant 0 : index
    %49 = vector.load %arg14[%c0_36, %c0_37] : memref<128x64xbf16, #tpu.memory_space<vmem>>, vector<128x64xbf16>
    %cst_38 = arith.constant dense<0.000000e+00> : vector<64x64xf32>
    %50 = tpu.matmul %48, %49, %cst_38 {dimension_numbers = #tpu.dot_dimension_numbers<[1], [0], [0], [1], [0, 0, 1, 1], [], []>} : vector<64x128xbf16>, vector<128x64xbf16>, vector<64x64xf32> -> vector<64x64xf32>
    %c0_39 = arith.constant 0 : index
    %c0_40 = arith.constant 0 : index
    %51 = vector.load %arg15[%c0_39, %c0_40] : memref<1x64xf32, #tpu.memory_space<vmem>>, vector<1x64xf32>
    %52 = vector.broadcast %51 : vector<1x64xf32> to vector<64x64xf32>
    %53 = arith.addf %50, %52 : vector<64x64xf32>
    %c0_41 = arith.constant 0 : index
    %c0_42 = arith.constant 0 : index
    %54 = vector.load %arg16[%c0_41, %c0_42] : memref<64x64xf32, #tpu.memory_space<vmem>>, vector<64x64xf32>
    tpu.vector_store %arg16[%c0_41, %c0_42], %53 {strides = array<i32>} : memref<64x64xf32, #tpu.memory_space<vmem>>, vector<64x64xf32>,
    return
  }
  func.func @transform_0(%arg0: i32) -> (i32, i32) {
    %c0_i32 = arith.constant 0 : i32
    %c0_i32_0 = arith.constant 0 : i32
    return %arg0, %c0_i32 : i32, i32
  }
  func.func @transform_1(%arg0: i32) -> (i32, i32) {
    %c0_i32 = arith.constant 0 : i32
    %c0_i32_0 = arith.constant 0 : i32
    %c0_i32_1 = arith.constant 0 : i32
    return %c0_i32, %c0_i32_0 : i32, i32
  }
  func.func @transform_2(%arg0: i32) -> (i32, i32) {
    %c0_i32 = arith.constant 0 : i32
    %c0_i32_0 = arith.constant 0 : i32
    %c0_i32_1 = arith.constant 0 : i32
    return %c0_i32, %c0_i32_0 : i32, i32
  }
  func.func @transform_3(%arg0: i32) -> (i32, i32) {
    %c0_i32 = arith.constant 0 : i32
    %c0_i32_0 = arith.constant 0 : i32
    %c0_i32_1 = arith.constant 0 : i32
    return %c0_i32, %c0_i32_0 : i32, i32
  }
  func.func @transform_4(%arg0: i32) -> (i32, i32) {
    %c0_i32 = arith.constant 0 : i32
    %c0_i32_0 = arith.constant 0 : i32
    %c0_i32_1 = arith.constant 0 : i32
    return %c0_i32, %c0_i32_0 : i32, i32
  }
  func.func @transform_5(%arg0: i32) -> (i32, i32) {
    %c0_i32 = arith.constant 0 : i32
    %c0_i32_0 = arith.constant 0 : i32
    %c0_i32_1 = arith.constant 0 : i32
    return %c0_i32, %c0_i32_0 : i32, i32
  }
  func.func @transform_6(%arg0: i32) -> (i32, i32) {
    %c0_i32 = arith.constant 0 : i32
    %c0_i32_0 = arith.constant 0 : i32
    %c0_i32_1 = arith.constant 0 : i32
    return %c0_i32, %c0_i32_0 : i32, i32
  }
  func.func @transform_7(%arg0: i32) -> (i32, i32) {
    %c0_i32 = arith.constant 0 : i32
    %c0_i32_0 = arith.constant 0 : i32
    %c0_i32_1 = arith.constant 0 : i32
    return %c0_i32, %c0_i32_0 : i32, i32
  }
  func.func @transform_8(%arg0: i32) -> (i32, i32) {
    %c0_i32 = arith.constant 0 : i32
    %c0_i32_0 = arith.constant 0 : i32
    %c0_i32_1 = arith.constant 0 : i32
    return %c0_i32, %c0_i32_0 : i32, i32
  }
  func.func @transform_9(%arg0: i32) -> (i32, i32) {
    %c0_i32 = arith.constant 0 : i32
    %c0_i32_0 = arith.constant 0 : i32
    %c0_i32_1 = arith.constant 0 : i32
    return %c0_i32, %c0_i32_0 : i32, i32
  }
  func.func @transform_10(%arg0: i32) -> (i32, i32) {
    %c0_i32 = arith.constant 0 : i32
    %c0_i32_0 = arith.constant 0 : i32
    %c0_i32_1 = arith.constant 0 : i32
    return %c0_i32, %c0_i32_0 : i32, i32
  }
  func.func @transform_11(%arg0: i32) -> (i32, i32) {
    %c0_i32 = arith.constant 0 : i32
    %c0_i32_0 = arith.constant 0 : i32
    %c0_i32_1 = arith.constant 0 : i32
    return %c0_i32, %c0_i32_0 : i32, i32
  }
  func.func @transform_12(%arg0: i32) -> (i32, i32) {
    %c0_i32 = arith.constant 0 : i32
    %c0_i32_0 = arith.constant 0 : i32
    %c0_i32_1 = arith.constant 0 : i32
    return %c0_i32, %c0_i32_0 : i32, i32
  }
  func.func @transform_13(%arg0: i32) -> (i32, i32) {
    %c0_i32 = arith.constant 0 : i32
    %c0_i32_0 = arith.constant 0 : i32
    %c0_i32_1 = arith.constant 0 : i32
    return %c0_i32, %c0_i32_0 : i32, i32
  }
  func.func @transform_14(%arg0: i32) -> (i32, i32) {
    %c0_i32 = arith.constant 0 : i32
    %c0_i32_0 = arith.constant 0 : i32
    %c0_i32_1 = arith.constant 0 : i32
    return %c0_i32, %c0_i32_0 : i32, i32
  }
  func.func @transform_15(%arg0: i32) -> (i32, i32) {
    %c0_i32 = arith.constant 0 : i32
    %c0_i32_0 = arith.constant 0 : i32
    return %arg0, %c0_i32 : i32, i32
  }
}

</mosaic_0001>

<bundles_post_ra>
// kernel: autoencoder_forward.1
= control target key start
LH: loop header
LB: loop body
LE: loop exit
PB: predicated region body
PF: predicated region fallthrough
CT: control target
= control target key end

     0   :  { %vm119_vm0 = vcmask 523264   ;;  %s1556_s0 = inlined_call_operand.vmem [shape: bf16[64,64], index: 0, kind: input, shape index: {}]   ;;  %s1557_s1 = inlined_call_operand.vmem [shape: bf16[64,128], index: 1, kind: input, shape index: {}]   ;;  %s1558_s2 = inlined_call_operand.vmem [shape: f32[1,128], index: 2, kind: input, shape index: {}]   ;;  %s1559_s3 = inlined_call_operand.vmem [shape: bf16[128,64], index: 3, kind: input, shape index: {}]   ;;  %s1560_s4 = inlined_call_operand.vmem [shape: f32[1,64], index: 4, kind: input, shape index: {}]   ;;  %s1561_s5 = inlined_call_operand.vmem [shape: bf16[64,32], index: 5, kind: input, shape index: {}]   ;;  %s1562_s6 = inlined_call_operand.vmem [shape: f32[1,32], index: 6, kind: input, shape index: {}]   ;;  %s1563_s7 = inlined_call_operand.vmem [shape: bf16[32,32], index: 7, kind: input, shape index: {}]   ;;  %s1564_s8 = inlined_call_operand.vmem [shape: f32[1,32], index: 8, kind: input, shape index: {}]   ;;  %s1565_s9 = inlined_call_operand.vmem [shape: bf16[32,64], index: 9, kind: input, shape index: {}]   ;;  %s1566_s10 = inlined_call_operand.vmem [shape: f32[1,64], index: 10, kind: input, shape index: {}]   ;;  %s1567_s11 = inlined_call_operand.vmem [shape: bf16[64,128], index: 11, kind: input, shape index: {}]   ;;  %s1568_s12 = inlined_call_operand.vmem [shape: f32[1,128], index: 12, kind: input, shape index: {}]   ;;  %s1569_s13 = inlined_call_operand.vmem [shape: bf16[128,64], index: 13, kind: input, shape index: {}]   ;;  %s1570_s14 = inlined_call_operand.vmem [shape: f32[1,64], index: 14, kind: input, shape index: {}]   ;;  %s1571_s15 = inlined_call_operand.hbm [shape: f32[64,64], index: 15, kind: output, shape index: {}]  }
   0x1   :  { %v1244_v0 = vld [vmem:[%s1557_s1] sm:$0xff]   ;;  %v1245_v1 = vld [vmem:[%s1557_s1 + $0x8] sm:$0xff]   ;;  %v1246_v2 = vld [vmem:[%s1557_s1 + $0x10] sm:$0xff]  }
   0x2   :  { %1121 = vmatprep.subr.bf16.mxu0 %v1244_v0  ;;  %v1248_v3 = vld [vmem:[%s1556_s0] sm:$0xff]   ;;  %v1247_v4 = vld [vmem:[%s1557_s1 + $0x18] sm:$0xff]   ;;  %v1253_v6 = vld [vmem:[%s1559_s3 + $0x8] sm:$0xff]  }
   0x3   :  { %1122 = vmatpush3.bf16.msra.mxu0 %v1244_v0  ;;  %1129 = vmatprep.mubr.msk.bf16.mxu0 %vm119_vm0, %v1248_v3  ;;  %v1252_v5 = vld [vmem:[%s1559_s3] sm:$0xff]   ;;  %v1249_v7 = vld [vmem:[%s1556_s0 + $0x8] sm:$0xff]   ;;  %v1254_v8 = vld [vmem:[%s1559_s3 + $0x10] sm:$0xff]  }
   0x4   :  { %1123 = vmatprep.subr.bf16.mxu0 %v1245_v1  ;;  %1137 = vmatprep.subr.bf16.mxu1 %v1252_v5  ;;  %v1250_v9 = vld [vmem:[%s1556_s0 + $0x10] sm:$0xff]   ;;  %v1255_v10 = vld [vmem:[%s1559_s3 + $0x18] sm:$0xff]   ;;  %v1256_v11 = vld [vmem:[%s1559_s3 + $0x20] sm:$0xff]  }
   0x5   :  { %1138 = vmatpush3.bf16.msra.mxu1 %v1252_v5  ;;  %v1251_v12 = vld [vmem:[%s1556_s0 + $0x18] sm:$0xff]   ;;  %v1257_v13 = vld [vmem:[%s1559_s3 + $0x28] sm:$0xff]  }
   0x6   :  { %1139 = vmatprep.subr.bf16.mxu1 %v1253_v6 }
   0x7   :  { %1124 = vmatpush3.bf16.msra.mxu0 %v1245_v1 }
   0x8   :  { %1125 = vmatprep.subr.bf16.mxu0 %v1246_v2 }
   0x9   :  { %1140 = vmatpush3.bf16.msra.mxu1 %v1253_v6 }
   0xa   :  { %1141 = vmatprep.subr.bf16.mxu1 %v1254_v8 }
   0xb   :  { %1126 = vmatpush3.bf16.msra.mxu0 %v1246_v2 }
   0xc   :  { %1127 = vmatprep.subr.bf16.mxu0 %v1247_v4 }
   0xd   :  { %1142 = vmatpush3.bf16.msra.mxu1 %v1254_v8 }
   0xe   :  { %1143 = vmatprep.subr.bf16.mxu1 %v1255_v10 }
   0xf   :  { %1128 = vmatpush3.bf16.msra.mxu0 %v1247_v4 }
  0x11   :  { %1144 = vmatpush3.bf16.msra.mxu1 %v1255_v10 }
  0x12   :  { %1130 = vmatmul.mubr.msk.bf16.vlgmr.msra.gmra.mrb[0].mxu0 %vm119_vm0, %v1249_v7  ;;  %1145 = vmatprep.subr.bf16.mxu1 %v1256_v11 }
  0x13   :  { %1133 = vmatprep.mubr.msk.bf16.mxu0 %vm119_vm0, %v1250_v9 }
  0x15   :  { %1146 = vmatpush3.bf16.msra.mxu1 %v1256_v11 }
  0x16   :  { %1147 = vmatprep.subr.bf16.mxu1 %v1257_v13 }
  0x1a   :  { %1134 = vmatmul.mubr.msk.bf16.gmra.mrb[4].mxu0 %vm119_vm0, %v1251_v12 }
  0x1b   :  { %20 = vsyncpa [#allocation3], 0  ;;  %1148 = vmatpush3.bf16.msra.mxu1 %v1257_v13  ;;  %v1258_v14 = vld [vmem:[%s1559_s3 + $0x30] sm:$0xff]   ;;  %v1259_v15 = vld [vmem:[%s1559_s3 + $0x38] sm:$0xff]   ;;  %vm508_vm1 = vcmask 261120   ;;  %s1304_s1 = smov [#allocation2]  }
  0x1c   :  { %1149 = vmatprep.subr.bf16.mxu1 %v1258_v14  ;;  %v1260_v16 = vld [vmem:[%s1561_s5] sm:$0xff]   ;;  %v1261_v17 = vld [vmem:[%s1561_s5 + $0x8] sm:$0xff]   ;;  %v1262_v47 = vld [vmem:[%s1561_s5 + $0x10] sm:$0xff]   ;;  %s987_s20 = sshll.u32 %s1304_s1, 4  ;;  %s988_s20 = int_to_ptr.vmem [resolvable:$true] %s987_s20 }
  0x1d   :  { %1161 = vmatprep.subr.bf16.mxu0 %v1260_v16  ;;  %v998_v18 = vld [vmem:[%s1558_s2] ss:$0 sm:$0xff]  ;;  %v1263_v48 = vld [vmem:[%s1561_s5 + $0x18] sm:$0xff]   ;;  %p1285_p1 = scmp.lt.s32.totalorder %s988_s20, %s988_s20 }
  0x1e   :  { %1162 = vmatpush3.bf16.msra.mxu0 %v1260_v16  ;;  %v1264_v49 = vld [vmem:[%s1563_s7] sm:$0xff]  }
  0x1f   :  { %1150 = vmatpush3.bf16.msra.mxu1 %v1258_v14  ;;  %1163 = vmatprep.subr.bf16.mxu0 %v1261_v17  ;;  %v1011_v50 = vld [vmem:[%s1560_s4] ss:$0 sm:$0xff] }
  0x20   :  { %1151 = vmatprep.subr.bf16.mxu1 %v1259_v15  ;;  %v1266_v16 = vld [vmem:[%s1565_s9] sm:$0xff]  }
  0x22   :  { %1164 = vmatpush3.bf16.msra.mxu0 %v1261_v17  ;;  %v1020_v17 = vld [vmem:[%s1562_s6] ss:$0 sm:$0xff] }
  0x23   :  { %1152 = vmatpush3.bf16.msra.mxu1 %v1259_v15  ;;  %1165 = vmatprep.subr.bf16.mxu0 %v1262_v47  ;;  %v1265_v15 = vld [vmem:[%s1563_s7 + $0x8] sm:$0xff]  }
  0x24   :  { %1189 = vmatprep.subr.bf16.mxu1 %v1266_v16 }
  0x26   :  { %1166 = vmatpush3.bf16.msra.mxu0 %v1262_v47  ;;  %v1268_v47 = vld [vmem:[%s1567_s11] sm:$0xff]  }
  0x27   :  { %1167 = vmatprep.subr.bf16.mxu0 %v1263_v48 }
  0x2a   :  { %1168 = vmatpush3.bf16.msra.mxu0 %v1263_v48  ;;  %v1269_v48 = vld [vmem:[%s1567_s11 + $0x8] sm:$0xff]  }
  0x2b   :  { %1177 = vmatprep.subr.bf16.mxu0 %v1264_v49 }
  0xe5   :  { %v1131_v19 = vpop.f32.mrb[0].mxu0 }
  0xe6   :  { %v175_v20 = vadd.f32 %v1131_v19, %v998_v18  ;;  %v166_v21 = vpop.f32.mrb[1].mxu0 }
  0xe7   :  { %v167_v22 = vadd.f32 %v998_v18, %v166_v21  ;;  %v1132_v23 = vpop.f32.mrb[2].mxu0 }
  0xe8   :  { %v178_v24 = vadd.f32 %v1132_v23, %v998_v18  ;;  %v169_v25 = vpop.f32.mrb[3].mxu0  ;;  %v199_v27 = vmax.f32 %v175_v20, 0.0 }
  0xe9   :  { %v170_v26 = vadd.f32 %v998_v18, %v169_v25  ;;  %v197_v29 = vmax.f32 %v167_v22, 0.0 }
  0xea   :  { %v200_v28 = vmax.f32 %v178_v24, 0.0 }
  0xeb   :  { %v198_v30 = vmax.f32 %v170_v26, 0.0 }
  0xec   :  { %v206_v31 = vpack.c.bf16 %v200_v28, %v199_v27 }
  0xed   :  { %v1135_v32 = vpop.f32.mrb[4].mxu0  ;;  %v205_v33 = vpack.c.bf16 %v198_v30, %v197_v29 }
  0xee   :  { %v191_v34 = vadd.f32 %v1135_v32, %v998_v18  ;;  %v182_v35 = vpop.f32.mrb[5].mxu0 }
  0xef   :  { %v183_v36 = vadd.f32 %v998_v18, %v182_v35  ;;  %v1136_v37 = vpop.f32.mrb[6].mxu0  ;;  %1153 = vmatprep.mubr.bf16.mxu1 %v205_v33 }
  0xf0   :  { %v194_v38 = vadd.f32 %v1136_v37, %v998_v18  ;;  %v185_v39 = vpop.f32.mrb[7].mxu0  ;;  %1154 = vmatmul.mubr.bf16.vlgmr.msra.gmra.mrb[0].mxu1 %v206_v31  ;;  %v203_v41 = vmax.f32 %v191_v34, 0.0 }
  0xf1   :  { %v186_v40 = vadd.f32 %v998_v18, %v185_v39  ;;  %v201_v43 = vmax.f32 %v183_v36, 0.0  ;;  %1190 = vmatpush3.bf16.msra.mxu1 %v1266_v16  ;;  %v1272_v16 = vld [vmem:[%s1569_s13] sm:$0xff]  }
  0xf2   :  { %v204_v42 = vmax.f32 %v194_v38, 0.0 }
  0xf3   :  { %v202_v44 = vmax.f32 %v186_v40, 0.0 }
  0xf4   :  { %v208_v45 = vpack.c.bf16 %v204_v42, %v203_v41 }
  0xf5   :  { %v207_v46 = vpack.c.bf16 %v202_v44, %v201_v43 }
  0xf7   :  { %1157 = vmatprep.mubr.bf16.mxu1 %v207_v46  ;;  %v1267_v46 = vld [vmem:[%s1565_s9 + $0x8] sm:$0xff]  }
  0xf8   :  { %1158 = vmatmul.mubr.bf16.gmra.mrb[4].mxu1 %v208_v45  ;;  %1191 = vmatprep.subr.bf16.mxu1 %v1267_v46 }
  0xf9   :  { %1192 = vmatpush3.bf16.msra.mxu1 %v1267_v46 }
  0xfa   :  { %1217 = vmatprep.subr.bf16.mxu1 %v1272_v16 }
 0x1c3   :  { %v1155_v51 = vpop.f32.mrb[0].mxu1 }
 0x1c4   :  { %v323_v52 = vadd.f32 %v1155_v51, %v1011_v50  ;;  %v314_v53 = vpop.f32.mrb[1].mxu1 }
 0x1c5   :  { %v315_v54 = vadd.f32 %v1011_v50, %v314_v53  ;;  %v1156_v55 = vpop.f32.mrb[2].mxu1 }
 0x1c6   :  { %v326_v56 = vadd.f32 %v1156_v55, %v1011_v50  ;;  %v317_v57 = vpop.f32.mrb[3].mxu1  ;;  %v347_v59 = vmax.f32 %v323_v52, 0.0 }
 0x1c7   :  { %v318_v58 = vadd.f32 %v1011_v50, %v317_v57  ;;  %v345_v61 = vmax.f32 %v315_v54, 0.0 }
 0x1c8   :  { %v348_v60 = vmax.f32 %v326_v56, 0.0 }
 0x1c9   :  { %v346_v62 = vmax.f32 %v318_v58, 0.0 }
 0x1ca   :  { %v354_v63 = vpack.c.bf16 %v348_v60, %v347_v59 }
 0x1cb   :  { %v353_v0 = vpack.c.bf16 %v346_v62, %v345_v61  ;;  %v1159_v1 = vpop.f32.mrb[4].mxu1 }
 0x1cc   :  { %v339_v2 = vadd.f32 %v1159_v1, %v1011_v50  ;;  %v330_v3 = vpop.f32.mrb[5].mxu1 }
 0x1cd   :  { %v331_v4 = vadd.f32 %v1011_v50, %v330_v3  ;;  %v1160_v5 = vpop.f32.mrb[6].mxu1  ;;  %1169 = vmatprep.mubr.msk.bf16.mxu0 %vm119_vm0, %v353_v0 }
 0x1ce   :  { %v342_v6 = vadd.f32 %v1160_v5, %v1011_v50  ;;  %v333_v7 = vpop.f32.mrb[7].mxu1  ;;  %1170 = vmatmul.mubr.msk.bf16.vlgmr.msra.gmra.mrb[8].mxu0 %vm119_vm0, %v354_v63  ;;  %v351_v9 = vmax.f32 %v339_v2, 0.0 }
 0x1cf   :  { %v334_v8 = vadd.f32 %v1011_v50, %v333_v7  ;;  %1178 = vmatpush3.bf16.msra.mxu0 %v1264_v49  ;;  %v349_v11 = vmax.f32 %v331_v4, 0.0  ;;  %v1029_v49 = vld [vmem:[%s1564_s8] ss:$0 sm:$0xff] }
 0x1d0   :  { %v352_v10 = vmax.f32 %v342_v6, 0.0  ;;  %1179 = vmatprep.subr.bf16.mxu0 %v1265_v15 }
 0x1d1   :  { %v350_v12 = vmax.f32 %v334_v8, 0.0 }
 0x1d2   :  { %v356_v13 = vpack.c.bf16 %v352_v10, %v351_v9 }
 0x1d3   :  { %v355_v14 = vpack.c.bf16 %v350_v12, %v349_v11  ;;  %1180 = vmatpush3.bf16.msra.mxu0 %v1265_v15  ;;  %v1271_v15 = vld [vmem:[%s1567_s11 + $0x18] sm:$0xff]  }
 0x1d4   :  { %1201 = vmatprep.subr.bf16.mxu0 %v1268_v47 }
 0x1d5   :  { %1173 = vmatprep.mubr.msk.bf16.mxu0 %vm119_vm0, %v355_v14  ;;  %v1270_v14 = vld [vmem:[%s1567_s11 + $0x10] sm:$0xff]  }
 0x1d6   :  { %1174 = vmatmul.mubr.msk.bf16.gmra.mrb[12].mxu0 %vm119_vm0, %v356_v13 }
 0x2a1   :  { %v1171_v18 = vpop.f32.mrb[8].mxu0 }
 0x2a2   :  { %v451_v19 = vadd.f32 %v1171_v18, %v1020_v17  ;;  %v442_v20 = vpop.f32.mrb[9].mxu0  ;;  %v1274_v18 = vld [vmem:[%s1569_s13 + $0x10] sm:$0xff]  }
 0x2a3   :  { %v443_v21 = vadd.f32 %v1020_v17, %v442_v20  ;;  %v1172_v22 = vpop.f32.mrb[10].mxu0  ;;  %v1276_v20 = vld [vmem:[%s1569_s13 + $0x20] sm:$0xff]  }
 0x2a4   :  { %v454_v23 = vadd.f32 %v1172_v22, %v1020_v17  ;;  %v445_v24 = vpop.f32.mrb[11].mxu0  ;;  %v475_v26 = vmax.f32 %v451_v19, 0.0  ;;  %v1275_v19 = vld [vmem:[%s1569_s13 + $0x18] sm:$0xff]   ;;  %v1036_v22 = vld [vmem:[%s1566_s10] ss:$0 sm:$0xff] }
 0x2a5   :  { %v446_v25 = vadd.f32 %v1020_v17, %v445_v24  ;;  %v473_v28 = vmax.f32 %v443_v21, 0.0  ;;  %v1277_v21 = vld [vmem:[%s1569_s13 + $0x28] sm:$0xff]  }
 0x2a6   :  { %v476_v27 = vmax.f32 %v454_v23, 0.0 }
 0x2a7   :  { %v474_v29 = vmax.f32 %v446_v25, 0.0 }
 0x2a8   :  { %v482_v30 = vpack.c.bf16 %v476_v27, %v475_v26 }
 0x2a9   :  { %v481_v31 = vpack.c.bf16 %v474_v29, %v473_v28  ;;  %v1175_v32 = vpop.f32.mrb[12].mxu0 }
 0x2aa   :  { %v467_v33 = vadd.f32 %v1175_v32, %v1020_v17  ;;  %v458_v34 = vpop.f32.mrb[13].mxu0 }
 0x2ab   :  { %v459_v35 = vadd.f32 %v1020_v17, %v458_v34  ;;  %v1176_v36 = vpop.f32.mrb[14].mxu0  ;;  %1181 = vmatprep.mubr.msk.bf16.mxu0 %vm508_vm1, %v481_v31 }
 0x2ac   :  { %v470_v37 = vadd.f32 %v1176_v36, %v1020_v17  ;;  %v461_v38 = vpop.f32.mrb[15].mxu0  ;;  %1182 = vmatmul.mubr.msk.bf16.vlgmr.msra.gmra.mrb[16].mxu0 %vm508_vm1, %v482_v30  ;;  %v479_v40 = vmax.f32 %v467_v33, 0.0 }
 0x2ad   :  { %v462_v39 = vadd.f32 %v1020_v17, %v461_v38  ;;  %v477_v42 = vmax.f32 %v459_v35, 0.0  ;;  %1202 = vmatpush3.bf16.msra.mxu0 %v1268_v47  ;;  %v1273_v17 = vld [vmem:[%s1569_s13 + $0x8] sm:$0xff]  }
 0x2ae   :  { %v480_v41 = vmax.f32 %v470_v37, 0.0  ;;  %1203 = vmatprep.subr.bf16.mxu0 %v1269_v48 }
 0x2af   :  { %v478_v43 = vmax.f32 %v462_v39, 0.0 }
 0x2b0   :  { %v484_v44 = vpack.c.bf16 %v480_v41, %v479_v40 }
 0x2b1   :  { %v483_v45 = vpack.c.bf16 %v478_v43, %v477_v42  ;;  %1204 = vmatpush3.bf16.msra.mxu0 %v1269_v48 }
 0x2b2   :  { %1205 = vmatprep.subr.bf16.mxu0 %v1270_v14 }
 0x2b3   :  { %1185 = vmatprep.mubr.msk.bf16.mxu0 %vm508_vm1, %v483_v45 }
 0x2b4   :  { %1186 = vmatmul.mubr.msk.bf16.gmra.mrb[20].mxu0 %vm508_vm1, %v484_v44 }
 0x2b5   :  { %1206 = vmatpush3.bf16.msra.mxu0 %v1270_v14 }
 0x2b6   :  { %1207 = vmatprep.subr.bf16.mxu0 %v1271_v15 }
 0x2b9   :  { %1208 = vmatpush3.bf16.msra.mxu0 %v1271_v15 }
 0x37f   :  { %v1183_v50 = vpop.f32.mrb[16].mxu0 }
 0x380   :  { %v564_v51 = vadd.f32 %v1183_v50, %v1029_v49  ;;  %v555_v52 = vpop.f32.mrb[17].mxu0 }
 0x381   :  { %v556_v53 = vadd.f32 %v1029_v49, %v555_v52  ;;  %v1184_v54 = vpop.f32.mrb[18].mxu0  ;;  %v1279_v52 = vld [vmem:[%s1569_s13 + $0x38] sm:$0xff]  }
 0x382   :  { %v567_v55 = vadd.f32 %v1184_v54, %v1029_v49  ;;  %v558_v56 = vpop.f32.mrb[19].mxu0  ;;  %v588_v58 = vmax.f32 %v564_v51, 0.0  ;;  %v1278_v51 = vld [vmem:[%s1569_s13 + $0x30] sm:$0xff]  }
 0x383   :  { %v559_v57 = vadd.f32 %v1029_v49, %v558_v56  ;;  %v586_v60 = vmax.f32 %v556_v53, 0.0  ;;  %v1043_v53 = vld [vmem:[%s1568_s12] ss:$0 sm:$0xff] }
 0x384   :  { %v589_v59 = vmax.f32 %v567_v55, 0.0 }
 0x385   :  { %v587_v61 = vmax.f32 %v559_v57, 0.0 }
 0x386   :  { %v595_v62 = vpack.c.bf16 %v589_v59, %v588_v58 }
 0x387   :  { %v594_v63 = vpack.c.bf16 %v587_v61, %v586_v60  ;;  %v1187_v0 = vpop.f32.mrb[20].mxu0 }
 0x388   :  { %v580_v1 = vadd.f32 %v1187_v0, %v1029_v49  ;;  %v571_v2 = vpop.f32.mrb[21].mxu0 }
 0x389   :  { %v572_v3 = vadd.f32 %v1029_v49, %v571_v2  ;;  %v1188_v4 = vpop.f32.mrb[22].mxu0  ;;  %1193 = vmatprep.mubr.msk.bf16.mxu1 %vm508_vm1, %v594_v63 }
 0x38a   :  { %v583_v5 = vadd.f32 %v1188_v4, %v1029_v49  ;;  %v574_v6 = vpop.f32.mrb[23].mxu0  ;;  %1194 = vmatmul.mubr.msk.bf16.vlgmr.msra.gmra.mrb[8].mxu1 %vm508_vm1, %v595_v62  ;;  %v592_v8 = vmax.f32 %v580_v1, 0.0 }
 0x38b   :  { %v575_v7 = vadd.f32 %v1029_v49, %v574_v6  ;;  %v590_v10 = vmax.f32 %v572_v3, 0.0  ;;  %1218 = vmatpush3.bf16.msra.mxu1 %v1272_v16 }
 0x38c   :  { %v593_v9 = vmax.f32 %v583_v5, 0.0  ;;  %1219 = vmatprep.subr.bf16.mxu1 %v1273_v17 }
 0x38d   :  { %v591_v11 = vmax.f32 %v575_v7, 0.0 }
 0x38e   :  { %v597_v12 = vpack.c.bf16 %v593_v9, %v592_v8 }
 0x38f   :  { %v596_v13 = vpack.c.bf16 %v591_v11, %v590_v10  ;;  %1220 = vmatpush3.bf16.msra.mxu1 %v1273_v17 }
 0x390   :  { %1221 = vmatprep.subr.bf16.mxu1 %v1274_v18 }
 0x391   :  { %1197 = vmatprep.mubr.msk.bf16.mxu1 %vm508_vm1, %v596_v13 }
 0x392   :  { %1198 = vmatmul.mubr.msk.bf16.gmra.mrb[12].mxu1 %vm508_vm1, %v597_v12 }
 0x393   :  { %1222 = vmatpush3.bf16.msra.mxu1 %v1274_v18  ;;  %v1052_v18 = vld [vmem:[%s1570_s14] ss:$0 sm:$0xff]  ;;  %s1280_s14 = scalar_lea.vmem %s988_s20, 1024 }
 0x394   :  { %1223 = vmatprep.subr.bf16.mxu1 %v1275_v19  ;;  %p1281_p0 = scmp.ne.s32.totalorder %s988_s20, %s1280_s14  ;;  %p1286_p2 = scmp.lt.s32.totalorder %s1280_s14, %s1280_s14 }
 0x396   :  { %p1287_p3 = por %p1286_p2, %p1285_p1 }
 0x397   :  { %1224 = vmatpush3.bf16.msra.mxu1 %v1275_v19 }
 0x398   :  { %1225 = vmatprep.subr.bf16.mxu1 %v1276_v20  ;;  %p1288_p4 = pnand %p1287_p3, %p1281_p0 }
 0x39b   :  { %1226 = vmatpush3.bf16.msra.mxu1 %v1276_v20 }
 0x39c   :  { %1227 = vmatprep.subr.bf16.mxu1 %v1277_v21 }
 0x39f   :  { %1228 = vmatpush3.bf16.msra.mxu1 %v1277_v21 }
 0x3a0   :  { %1229 = vmatprep.subr.bf16.mxu1 %v1278_v51 }
 0x3a3   :  { %1230 = vmatpush3.bf16.msra.mxu1 %v1278_v51 }
 0x3a4   :  { %1231 = vmatprep.subr.bf16.mxu1 %v1279_v52 }
 0x3a7   :  { %1232 = vmatpush3.bf16.msra.mxu1 %v1279_v52 }
 0x45d   :  { %v1195_v23 = vpop.f32.mrb[8].mxu1 }
 0x45e   :  { %v676_v24 = vadd.f32 %v1195_v23, %v1036_v22  ;;  %v667_v25 = vpop.f32.mrb[9].mxu1 }
 0x45f   :  { %v668_v26 = vadd.f32 %v1036_v22, %v667_v25  ;;  %v1196_v27 = vpop.f32.mrb[10].mxu1 }
 0x460   :  { %v679_v28 = vadd.f32 %v1196_v27, %v1036_v22  ;;  %v670_v29 = vpop.f32.mrb[11].mxu1  ;;  %v700_v31 = vmax.f32 %v676_v24, 0.0 }
 0x461   :  { %v671_v30 = vadd.f32 %v1036_v22, %v670_v29  ;;  %v698_v33 = vmax.f32 %v668_v26, 0.0 }
 0x462   :  { %v701_v32 = vmax.f32 %v679_v28, 0.0 }
 0x463   :  { %v699_v34 = vmax.f32 %v671_v30, 0.0 }
 0x464   :  { %v707_v35 = vpack.c.bf16 %v701_v32, %v700_v31 }
 0x465   :  { %v706_v36 = vpack.c.bf16 %v699_v34, %v698_v33  ;;  %v1199_v37 = vpop.f32.mrb[12].mxu1 }
 0x466   :  { %v692_v38 = vadd.f32 %v1199_v37, %v1036_v22  ;;  %v683_v39 = vpop.f32.mrb[13].mxu1 }
 0x467   :  { %v684_v40 = vadd.f32 %v1036_v22, %v683_v39  ;;  %v1200_v41 = vpop.f32.mrb[14].mxu1  ;;  %1209 = vmatprep.mubr.msk.bf16.mxu0 %vm119_vm0, %v706_v36 }
 0x468   :  { %v695_v42 = vadd.f32 %v1200_v41, %v1036_v22  ;;  %v686_v43 = vpop.f32.mrb[15].mxu1  ;;  %1210 = vmatmul.mubr.msk.bf16.vlgmr.msra.gmra.mrb[24].mxu0 %vm119_vm0, %v707_v35  ;;  %v704_v45 = vmax.f32 %v692_v38, 0.0 }
 0x469   :  { %v687_v44 = vadd.f32 %v1036_v22, %v686_v43  ;;  %v702_v47 = vmax.f32 %v684_v40, 0.0 }
 0x46a   :  { %v705_v46 = vmax.f32 %v695_v42, 0.0 }
 0x46b   :  { %v703_v48 = vmax.f32 %v687_v44, 0.0 }
 0x46c   :  { %v709_v49 = vpack.c.bf16 %v705_v46, %v704_v45 }
 0x46d   :  { %v708_v50 = vpack.c.bf16 %v703_v48, %v702_v47 }
 0x46f   :  { %1213 = vmatprep.mubr.msk.bf16.mxu0 %vm119_vm0, %v708_v50 }
 0x470   :  { %1214 = vmatmul.mubr.msk.bf16.gmra.mrb[28].mxu0 %vm119_vm0, %v709_v49 }
 0x53b   :  { %v1211_v54 = vpop.f32.mrb[24].mxu0 }
 0x53c   :  { %v804_v55 = vadd.f32 %v1211_v54, %v1043_v53  ;;  %v795_v56 = vpop.f32.mrb[25].mxu0 }
 0x53d   :  { %v796_v57 = vadd.f32 %v1043_v53, %v795_v56  ;;  %v1212_v58 = vpop.f32.mrb[26].mxu0 }
 0x53e   :  { %v807_v59 = vadd.f32 %v1212_v58, %v1043_v53  ;;  %v798_v60 = vpop.f32.mrb[27].mxu0  ;;  %v828_v62 = vmax.f32 %v804_v55, 0.0 }
 0x53f   :  { %v799_v61 = vadd.f32 %v1043_v53, %v798_v60  ;;  %v826_v0 = vmax.f32 %v796_v57, 0.0 }
 0x540   :  { %v829_v63 = vmax.f32 %v807_v59, 0.0 }
 0x541   :  { %v827_v1 = vmax.f32 %v799_v61, 0.0 }
 0x542   :  { %v835_v2 = vpack.c.bf16 %v829_v63, %v828_v62 }
 0x543   :  { %v834_v3 = vpack.c.bf16 %v827_v1, %v826_v0  ;;  %v1215_v4 = vpop.f32.mrb[28].mxu0 }
 0x544   :  { %v820_v5 = vadd.f32 %v1215_v4, %v1043_v53  ;;  %v811_v6 = vpop.f32.mrb[29].mxu0 }
 0x545   :  { %v812_v7 = vadd.f32 %v1043_v53, %v811_v6  ;;  %v1216_v8 = vpop.f32.mrb[30].mxu0  ;;  %1233 = vmatprep.mubr.bf16.mxu1 %v834_v3 }
 0x546   :  { %v823_v9 = vadd.f32 %v1216_v8, %v1043_v53  ;;  %v814_v10 = vpop.f32.mrb[31].mxu0  ;;  %1234 = vmatmul.mubr.bf16.vlgmr.msra.gmra.mrb[16].mxu1 %v835_v2  ;;  %v832_v12 = vmax.f32 %v820_v5, 0.0 }
 0x547   :  { %v815_v11 = vadd.f32 %v1043_v53, %v814_v10  ;;  %v830_v14 = vmax.f32 %v812_v7, 0.0 }
 0x548   :  { %v833_v13 = vmax.f32 %v823_v9, 0.0 }
 0x549   :  { %v831_v15 = vmax.f32 %v815_v11, 0.0 }
 0x54a   :  { %v837_v16 = vpack.c.bf16 %v833_v13, %v832_v12 }
 0x54b   :  { %v836_v17 = vpack.c.bf16 %v831_v15, %v830_v14 }
 0x54d   :  { %1237 = vmatprep.mubr.bf16.mxu1 %v836_v17 }
 0x54e   :  { %1238 = vmatmul.mubr.bf16.gmra.mrb[20].mxu1 %v837_v16 }
 0x619   :  { %v1235_v19 = vpop.f32.mrb[16].mxu1 }
 0x61a   :  { %v952_v20 = vadd.f32 %v1235_v19, %v1052_v18  ;;  %v943_v21 = vpop.f32.mrb[17].mxu1 }
 0x61b   :  { %v944_v22 = vadd.f32 %v1052_v18, %v943_v21  ;;  %v1236_v23 = vpop.f32.mrb[18].mxu1 }
 0x61c   :  { %976 = vst.msk [vmem:[#allocation2 + $0x10] sm:$0xff] %vm119_vm0, %v952_v20  ;;  %v955_v24 = vadd.f32 %v1236_v23, %v1052_v18  ;;  %v946_v25 = vpop.f32.mrb[19].mxu1 }
 0x61d   :  { %974 = vst.msk [vmem:[#allocation2] sm:$0xff] %vm119_vm0, %v944_v22  ;;  %v947_v26 = vadd.f32 %v1052_v18, %v946_v25 }
 0x61e   :  { %977 = vst.msk [vmem:[#allocation2 + $0x18] sm:$0xff] %vm119_vm0, %v955_v24 }
 0x61f   :  { %975 = vst.msk [vmem:[#allocation2 + $0x8] sm:$0xff] %vm119_vm0, %v947_v26 }
 0x621   :  { %v1239_v27 = vpop.f32.mrb[20].mxu1 }
 0x622   :  { %v968_v28 = vadd.f32 %v1239_v27, %v1052_v18  ;;  %v959_v29 = vpop.f32.mrb[21].mxu1 }
 0x623   :  { %v960_v30 = vadd.f32 %v1052_v18, %v959_v29  ;;  %v1240_v31 = vpop.f32.mrb[22].mxu1 }
 0x624   :  { %980 = vst.msk [vmem:[#allocation2 + $0x30] sm:$0xff] %vm119_vm0, %v968_v28  ;;  %v971_v32 = vadd.f32 %v1240_v31, %v1052_v18  ;;  %v962_v33 = vpop.f32.mrb[23].mxu1 }
 0x625   :  { %978 = vst.msk [vmem:[#allocation2 + $0x20] sm:$0xff] %vm119_vm0, %v960_v30  ;;  %v963_v34 = vadd.f32 %v1052_v18, %v962_v33 }
 0x626   :  { %981 = vst.msk [vmem:[#allocation2 + $0x38] sm:$0xff] %vm119_vm0, %v971_v32 }
 0x627   :  { %979 = vst.msk [vmem:[#allocation2 + $0x28] sm:$0xff] %vm119_vm0, %v963_v34 }
 0x628   :  { %1291 = shalt.err (!%p1288_p4)
}
 0x629   :  { %s1292_s9 = scalar_lea.hbm %s1571_s15, 1024 }
 0x62a   :  { %p1293_p5 = scmp.ne.s32.totalorder %s1571_s15, %s1292_s9  ;;  %p1296_p6 = scmp.lt.u32.totalorder %s1292_s9, %s1571_s15 }
 0x62c   :  { %p1298_p7 = pnand %p1296_p6, %p1293_p5 }
 0x62e   :  { %1301 = shalt.err (!%p1298_p7)
}
 0x62f   :  { %s1305_s24 = smov 128   ;;  %s1306_s25 = smov 8  }
 0x630   :  { %993 = dma.vmem_to_hbm [thread:$0]  %s988_s20, 1024, %s1571_s15, [#allocation3], %s1305_s24, %s1305_s24, %s1306_s25  }
 0x631   :  { %1302 = dma.done.wait [#allocation3], 1024  }
 0x632   :  { %1303 = vsyncadd [#allocation3], 4294966272 }
 0x633   :  { %997 = vsyncpa [#allocation3], 1 }

</bundles_post_ra>
